<compile_context>
chip_gen: v7x
topology: tpu7x:2x2x1
jax: 0.10.0
libtpu: 0.0.40
codegen_flags: <defaults>
</compile_context>

<pallas_src>
import functools
import math

import jax
import jax.numpy as jnp
from jax.experimental import pallas as pl
from jax.experimental.pallas import tpu as pltpu

_LANE = 128


def _fused_kernel(x_ref, wcat_ref, bcat_ref, o_ref):
    # x_ref    : (N, C, ts) f32   channels on sublanes, spatial on lanes
    # wcat_ref : (2*Cp, C)  f32   rows [0:C) = W1^T, rows [Cp:Cp+C) = W2^T (rest zero)
    # bcat_ref : (2*Cp, 1)  f32
    # o_ref    : (N, C, ts)
    N, C, _ = o_ref.shape
    Cp = wcat_ref.shape[0] // 2
    w = wcat_ref[...]
    b = bcat_ref[...]
    for n in range(N):                                   # N tiny & static -> unrolled
        x = x_ref[n]                                     # (C, ts)
        # one MXU push per batch element for BOTH branches; bias bcast is one VPU op
        y = jnp.dot(w, x, preferred_element_type=jnp.float32) + b
        t1 = y[:C, :]                                    # sublane-aligned (start 0)
        t4 = y[Cp:Cp + C, :]                             # sublane-aligned (Cp % 8 == 0)
        o_ref[n] = (t1 * jax.nn.sigmoid(t1) + jax.nn.sigmoid(t4)).astype(o_ref.dtype)


def pack_params(w1, b1, w2, b2, dtype=jnp.float32):
    """Call-once packing of both squeezed (Cin, Cout) ConvTranspose2d weights/biases."""
    C = w1.shape[0]
    Cp = pl.cdiv(C, 8) * 8
    w_cat = jnp.zeros((2 * Cp, C), dtype)
    w_cat = w_cat.at[:C, :].set(w1.T.astype(dtype))
    w_cat = w_cat.at[Cp:Cp + C, :].set(w2.T.astype(dtype))
    b_cat = jnp.zeros((2 * Cp, 1), dtype)
    b_cat = b_cat.at[:C, 0].set(b1.astype(dtype))
    b_cat = b_cat.at[Cp:Cp + C, 0].set(b2.astype(dtype))
    return w_cat, b_cat


def _desired_parallel_steps():
    # v7x shards "parallel" grid axes across its 2 TensorCores -> want >= 2 steps there;
    # v5e/v6e have 1 TC, where every extra grid step is ~0.35 us of pure overhead -> 1.
    try:
        kind = jax.devices()[0].device_kind.lower()
    except Exception:
        return 1
    return 2 if ("v7" in kind or "tpu7" in kind) else 1


def _pick_spatial_tile(S, n_batch, n_chan, desired_steps):
    """Largest lane-dense spatial tile that divides S, fits ~2 MiB per buffer, and
    (when possible) leaves at least `desired_steps` grid steps."""
    bytes_per_lane = max(1, n_batch * n_chan * 4)
    cap = min(32768, max(_LANE, ((2 << 20) // bytes_per_lane) // _LANE * _LANE))
    if S % _LANE != 0:
        # Full-extent block needs no lane alignment and avoids any padding pass.
        if n_batch * n_chan * S * 4 <= (4 << 20):
            return S
        return -1  # rare: huge and not lane-aligned -> caller pads
    s_blocks = S // _LANE
    best = _LANE
    for d in range(1, s_blocks + 1):
        if s_blocks % d:
            continue
        ts = d * _LANE
        if ts <= cap and (s_blocks // d) >= desired_steps:
            best = ts
    return best


def _const_pipeline_mode():
    # Weight/bias blocks are grid-invariant -> single-buffer them (no double-buffer DMA).
    try:
        return pl.Buffered(1)
    except Exception:  # older jax without Buffered -> default pipelining
        return None


@functools.partial(jax.jit, static_argnames=("ts",))
def _run(x3, w_cat, b_cat, *, ts):
    N, C, S = x3.shape
    Cp2 = w_cat.shape[0]
    const_mode = _const_pipeline_mode()
    return pl.pallas_call(
        _fused_kernel,
        out_shape=jax.ShapeDtypeStruct((N, C, S), x3.dtype),
        grid_spec=pltpu.PrefetchScalarGridSpec(
            num_scalar_prefetch=0,
            grid=(S // ts,),
            in_specs=[
                pl.BlockSpec((N, C, ts), lambda s: (0, 0, s)),               # x slab
                pl.BlockSpec((Cp2, C), lambda s: (0, 0),
                             pipeline_mode=const_mode),                      # stacked W
                pl.BlockSpec((Cp2, 1), lambda s: (0, 0),
                             pipeline_mode=const_mode),                      # stacked b
            ],
            out_specs=pl.BlockSpec((N, C, ts), lambda s: (0, 0, s)),
        ),
        compiler_params=pltpu.CompilerParams(
            dimension_semantics=("parallel",),
        ),
    )(x3, w_cat, b_cat)


def fused_double_convtranspose_silu(x_nchw, w_cat, b_cat):
    """x_nchw: (N, C, H, W) f32. w_cat/b_cat: outputs of pack_params."""
    N, C, H, W = x_nchw.shape
    S = H * W
    x3 = x_nchw.reshape(N, C, S)                          # free reshape, no transpose
    ts = _pick_spatial_tile(S, N, C, _desired_parallel_steps())
    if ts < 0:
        # TODO(synk): rare fallback (huge, non-128-aligned S) — pad instead of a
        # masked-tail store; never hit for this module's shapes.
        S_pad = pl.cdiv(S, _LANE) * _LANE
        x3 = jnp.pad(x3, ((0, 0), (0, 0), (0, S_pad - S)))
        ts = _pick_spatial_tile(S_pad, N, C, _desired_parallel_steps())
        out3 = _run(x3, w_cat, b_cat, ts=ts)[:, :, :S]
    else:
        out3 = _run(x3, w_cat, b_cat, ts=ts)
    return out3.reshape(N, C, H, W)


def _reference(x_nchw, w1, b1, w2, b2):
    # Pure-JAX reference of the PyTorch forward.
    t1 = jnp.einsum("nihw,io->nohw", x_nchw, w1) + b1[None, :, None, None]
    t4 = jnp.einsum("nihw,io->nohw", x_nchw, w2) + b2[None, :, None, None]
    return t1 * jax.nn.sigmoid(t1) + jax.nn.sigmoid(t4)


if __name__ == "__main__":
    # Module fixes C_in = C_out = 7; use a small spatial size for the primary check.
    N, C, H, W = 2, 7, 16, 16

    key = jax.random.PRNGKey(0)
    kx, kw1, kb1, kw2, kb2 = jax.random.split(key, 5)

    x = jax.random.normal(kx, (N, C, H, W), dtype=jnp.float32)

    # Deterministic params mimicking PyTorch's default uniform(-1/sqrt(fan), +1/sqrt(fan)).
    # ConvTranspose2d weight is (Cin, Cout, 1, 1); we keep the squeezed (Cin, Cout) form.
    bound = 1.0 / math.sqrt(C * 1 * 1)
    w1 = jax.random.uniform(kw1, (C, C), jnp.float32, -bound, bound)
    b1 = jax.random.uniform(kb1, (C,), jnp.float32, -bound, bound)
    w2 = jax.random.uniform(kw2, (C, C), jnp.float32, -bound, bound)
    b2 = jax.random.uniform(kb2, (C,), jnp.float32, -bound, bound)

    # Hoisted, call-once parameter packing (not on the per-call path).
    w_cat, b_cat = pack_params(w1, b1, w2, b2)

    out = jax.block_until_ready(fused_double_convtranspose_silu(x, w_cat, b_cat))
    ref = _reference(x, w1, b1, w2, b2)
    assert out.shape == (N, C, H, W)
    assert jnp.allclose(out, ref, atol=1e-5, rtol=1e-5), "mismatch vs reference (small)"

    # Also exercise the module's nominal shape (1, 7, 64, 64): S=4096 ->
    # one step on v5e/v6e (ts=4096), two parallel steps on v7x (ts=2048).
    x_big = jax.random.normal(kx, (1, C, 64, 64), dtype=jnp.float32)
    out_big = jax.block_until_ready(fused_double_convtranspose_silu(x_big, w_cat, b_cat))
    ref_big = _reference(x_big, w1, b1, w2, b2)
    assert jnp.allclose(out_big, ref_big, atol=1e-5, rtol=1e-5), "mismatch vs reference (big)"

    print("KERNEL_OK")
</pallas_src>

<mosaic_0001>
module attributes {stable_mosaic.version = 11 : i64} {
  func.func @_fused_kernel(%arg0: i32, %arg1: memref<2x7x256xf32, #tpu.memory_space<vmem>>, %arg2: memref<16x7xf32, #tpu.memory_space<vmem>>, %arg3: memref<16x1xf32, #tpu.memory_space<vmem>>, %arg4: memref<2x7x256xf32, #tpu.memory_space<vmem>>) attributes {dimension_semantics = [#tpu.dimension_semantics<parallel>], iteration_bounds = array<i64: 1>, scalar_prefetch = 0 : i64, scratch_operands = 0 : i64, tpu.core_type = #tpu.core_type<tc>, window_params = [{transform_indices = @transform_0, window_bounds = array<i64: 2, 7, 256>}, {pipeline_mode = #tpu.pipeline_mode<synchronous>, transform_indices = @transform_1, window_bounds = array<i64: 16, 7>}, {pipeline_mode = #tpu.pipeline_mode<synchronous>, transform_indices = @transform_2, window_bounds = array<i64: 16, 1>}, {transform_indices = @transform_3, window_bounds = array<i64: 2, 7, 256>}]} {
    %c0 = arith.constant 0 : index
    %c0_0 = arith.constant 0 : index
    %0 = vector.load %arg2[%c0, %c0_0] : memref<16x7xf32, #tpu.memory_space<vmem>>, vector<16x7xf32>
    %c0_1 = arith.constant 0 : index
    %c0_2 = arith.constant 0 : index
    %1 = vector.load %arg3[%c0_1, %c0_2] : memref<16x1xf32, #tpu.memory_space<vmem>>, vector<16x1xf32>
    %c0_3 = arith.constant 0 : index
    %c0_4 = arith.constant 0 : index
    %c0_5 = arith.constant 0 : index
    %2 = vector.load %arg1[%c0_3, %c0_4, %c0_5] : memref<2x7x256xf32, #tpu.memory_space<vmem>>, vector<1x7x256xf32>
    %3 = vector.shape_cast %2 : vector<1x7x256xf32> to vector<7x256xf32>
    %cst = arith.constant dense<0.000000e+00> : vector<16x256xf32>
    %4 = tpu.matmul %0, %3, %cst {dimension_numbers = #tpu.dot_dimension_numbers<[1], [0], [0], [1], [0, 0, 1, 1], [], []>} : vector<16x7xf32>, vector<7x256xf32>, vector<16x256xf32> -> vector<16x256xf32>
    %5 = vector.broadcast %1 : vector<16x1xf32> to vector<16x256xf32>
    %6 = arith.addf %4, %5 : vector<16x256xf32>
    %7 = vector.extract_strided_slice %6 {offsets = [0, 0], sizes = [7, 256], strides = [1, 1]} : vector<16x256xf32> to vector<7x256xf32>
    %8 = vector.extract_strided_slice %6 {offsets = [8, 0], sizes = [7, 256], strides = [1, 1]} : vector<16x256xf32> to vector<7x256xf32>
    %9 = arith.negf %7 : vector<7x256xf32>
    %10 = math.exp %9 : vector<7x256xf32>
    %cst_6 = arith.constant 1.000000e+00 : f32
    %11 = vector.broadcast %cst_6 : f32 to vector<7x256xf32>
    %12 = arith.addf %11, %10 : vector<7x256xf32>
    %13 = arith.divf %11, %12 : vector<7x256xf32>
    %14 = arith.mulf %7, %13 : vector<7x256xf32>
    %15 = arith.negf %8 : vector<7x256xf32>
    %16 = math.exp %15 : vector<7x256xf32>
    %cst_7 = arith.constant 1.000000e+00 : f32
    %17 = vector.broadcast %cst_7 : f32 to vector<7x256xf32>
    %18 = arith.addf %17, %16 : vector<7x256xf32>
    %19 = arith.divf %17, %18 : vector<7x256xf32>
    %20 = arith.addf %14, %19 : vector<7x256xf32>
    %c0_8 = arith.constant 0 : index
    %c0_9 = arith.constant 0 : index
    %c0_10 = arith.constant 0 : index
    %21 = vector.load %arg4[%c0_8, %c0_9, %c0_10] : memref<2x7x256xf32, #tpu.memory_space<vmem>>, vector<1x7x256xf32>
    %22 = vector.shape_cast %21 : vector<1x7x256xf32> to vector<7x256xf32>
    %23 = vector.shape_cast %20 : vector<7x256xf32> to vector<1x7x256xf32>
    tpu.vector_store %arg4[%c0_8, %c0_9, %c0_10], %23 {strides = array<i32>} : memref<2x7x256xf32, #tpu.memory_space<vmem>>, vector<1x7x256xf32>,
    %c1 = arith.constant 1 : index
    %c0_11 = arith.constant 0 : index
    %c0_12 = arith.constant 0 : index
    %24 = vector.load %arg1[%c1, %c0_11, %c0_12] : memref<2x7x256xf32, #tpu.memory_space<vmem>>, vector<1x7x256xf32>
    %25 = vector.shape_cast %24 : vector<1x7x256xf32> to vector<7x256xf32>
    %cst_13 = arith.constant dense<0.000000e+00> : vector<16x256xf32>
    %26 = tpu.matmul %0, %25, %cst_13 {dimension_numbers = #tpu.dot_dimension_numbers<[1], [0], [0], [1], [0, 0, 1, 1], [], []>} : vector<16x7xf32>, vector<7x256xf32>, vector<16x256xf32> -> vector<16x256xf32>
    %27 = vector.broadcast %1 : vector<16x1xf32> to vector<16x256xf32>
    %28 = arith.addf %26, %27 : vector<16x256xf32>
    %29 = vector.extract_strided_slice %28 {offsets = [0, 0], sizes = [7, 256], strides = [1, 1]} : vector<16x256xf32> to vector<7x256xf32>
    %30 = vector.extract_strided_slice %28 {offsets = [8, 0], sizes = [7, 256], strides = [1, 1]} : vector<16x256xf32> to vector<7x256xf32>
    %31 = arith.negf %29 : vector<7x256xf32>
    %32 = math.exp %31 : vector<7x256xf32>
    %cst_14 = arith.constant 1.000000e+00 : f32
    %33 = vector.broadcast %cst_14 : f32 to vector<7x256xf32>
    %34 = arith.addf %33, %32 : vector<7x256xf32>
    %35 = arith.divf %33, %34 : vector<7x256xf32>
    %36 = arith.mulf %29, %35 : vector<7x256xf32>
    %37 = arith.negf %30 : vector<7x256xf32>
    %38 = math.exp %37 : vector<7x256xf32>
    %cst_15 = arith.constant 1.000000e+00 : f32
    %39 = vector.broadcast %cst_15 : f32 to vector<7x256xf32>
    %40 = arith.addf %39, %38 : vector<7x256xf32>
    %41 = arith.divf %39, %40 : vector<7x256xf32>
    %42 = arith.addf %36, %41 : vector<7x256xf32>
    %c1_16 = arith.constant 1 : index
    %c0_17 = arith.constant 0 : index
    %c0_18 = arith.constant 0 : index
    %43 = vector.load %arg4[%c1_16, %c0_17, %c0_18] : memref<2x7x256xf32, #tpu.memory_space<vmem>>, vector<1x7x256xf32>
    %44 = vector.shape_cast %43 : vector<1x7x256xf32> to vector<7x256xf32>
    %45 = vector.shape_cast %42 : vector<7x256xf32> to vector<1x7x256xf32>
    tpu.vector_store %arg4[%c1_16, %c0_17, %c0_18], %45 {strides = array<i32>} : memref<2x7x256xf32, #tpu.memory_space<vmem>>, vector<1x7x256xf32>,
    return
  }
  func.func @transform_0(%arg0: i32) -> (i32, i32, i32) {
    %c0_i32 = arith.constant 0 : i32
    %c0_i32_0 = arith.constant 0 : i32
    %c0_i32_1 = arith.constant 0 : i32
    return %c0_i32, %c0_i32_0, %arg0 : i32, i32, i32
  }
  func.func @transform_1(%arg0: i32) -> (i32, i32) {
    %c0_i32 = arith.constant 0 : i32
    %c0_i32_0 = arith.constant 0 : i32
    %c0_i32_1 = arith.constant 0 : i32
    return %c0_i32, %c0_i32_0 : i32, i32
  }
  func.func @transform_2(%arg0: i32) -> (i32, i32) {
    %c0_i32 = arith.constant 0 : i32
    %c0_i32_0 = arith.constant 0 : i32
    %c0_i32_1 = arith.constant 0 : i32
    return %c0_i32, %c0_i32_0 : i32, i32
  }
  func.func @transform_3(%arg0: i32) -> (i32, i32, i32) {
    %c0_i32 = arith.constant 0 : i32
    %c0_i32_0 = arith.constant 0 : i32
    %c0_i32_1 = arith.constant 0 : i32
    return %c0_i32, %c0_i32_0, %arg0 : i32, i32, i32
  }
}

</mosaic_0001>

<bundles_post_ra>
// kernel: _run.1
= control target key start
LH: loop header
LB: loop body
LE: loop exit
PB: predicated region body
PF: predicated region fallthrough
CT: control target
= control target key end

     0   :  { %vm37_vm0 = vcmask 1046528   ;;  %vm30_vm1 = vcmask 56320   ;;  %v327_v3 = vmov 0.0   ;;  %v328_v8 = vmov 0   ;;  %s389_s0 = inlined_call_operand.vmem [shape: f32[2,7,256], index: 0, kind: input, shape index: {}]   ;;  %s390_s1 = inlined_call_operand.vmem [shape: f32[16,7], index: 1, kind: input, shape index: {}]   ;;  %s391_s2 = inlined_call_operand.vmem [shape: f32[16,1], index: 2, kind: input, shape index: {}]   ;;  %s392_s3 = inlined_call_operand.vmem [shape: f32[2,7,256], index: 3, kind: output, shape index: {}]  }
   0x1   :  { %v19_v0 = vld [vmem:[%s389_s0 + $0x8] sm:$0x7f]  ;;  %v281_v1 = vld [vmem:[%s389_s0 + $0x18] sm:$0x7f]  ;;  %v18_v2 = vld [vmem:[%s389_s0] sm:$0x7f]  ;;  %108 = vmatprep.mubr.f32.mxu0 %v327_v3  ;;  %224 = vmatprep.mubr.f32.mxu1 %v327_v3 }
   0x2   :  { %272 = vmatprep.subr.msk.mxu0 %vm37_vm0, %v19_v0  ;;  %282 = vmatprep.subr.msk.mxu1 %vm37_vm0, %v281_v1  ;;  %v280_v4 = vld [vmem:[%s389_s0 + $0x10] sm:$0x7f]  ;;  %v14_v5 = vld [vmem:[%s390_s1] sm:$0xff]  ;;  %v15_v7 = vld [vmem:[%s390_s1 + $0x8] sm:$0xff] }
   0x3   :  { %273 = vmatpush1.msk.msra.mxu0 %vm37_vm0, %v18_v2  ;;  %283 = vmatpush1.msk.msra.mxu1 %vm37_vm0, %v280_v4  ;;  %v16_v6 = vld [vmem:[%s391_s2] sm:$0xff]  ;;  %v17_v9 = vld [vmem:[%s391_s2 + $0x8] sm:$0xff] }
   0x4   :  { %274 = vmatmul.mubr.msk.f32.vlgmr.msra.gmra.mrb[0].mxu0 %vm30_vm1, %v14_v5  ;;  %284 = vmatmul.mubr.msk.f32.vlgmr.msra.gmra.mrb[0].mxu1 %vm30_vm1, %v14_v5 }
   0x5   :  { %114 = vmatprep.mubr.f32.mxu0 %v327_v3  ;;  %230 = vmatprep.mubr.f32.mxu1 %v327_v3 }
   0x6   :  { %294 = vset.pattern.permute.xlu0 %v328_v8 }
   0x7   :  { %22 = vperm.xlu0 %294, %v16_v6  }
   0x8   :  { %275 = vmatmul.mubr.msk.f32.gmra.mrb[2].mxu0 %vm30_vm1, %v15_v7  ;;  %285 = vmatmul.mubr.msk.f32.gmra.mrb[2].mxu1 %vm30_vm1, %v15_v7 }
   0xb   :  { %27 = vperm.xlu0 %294, %v17_v9  }
  0x86   :  { %v23_v10 = vpop.permute.xlu0 %22 }
  0x8a   :  { %v28_v21 = vpop.permute.xlu0 %27 }
  0xd7   :  { %v110_v11 = vpop.f32.mrb[0].mxu0  ;;  %v226_v12 = vpop.f32.mrb[0].mxu1 }
  0xd8   :  { %v111_v13 = vadd.f32 %v110_v11, %v23_v10  ;;  %v227_v14 = vadd.f32 %v226_v12, %v23_v10  ;;  %v112_v15 = vpop.f32.mrb[1].mxu0  ;;  %v228_v16 = vpop.f32.mrb[1].mxu1 }
  0xd9   :  { %v113_v17 = vadd.f32 %v112_v15, %v23_v10  ;;  %v229_v18 = vadd.f32 %v228_v16, %v23_v10 }
  0xda   :  { %v276_v19 = vmul.f32 -1.442695, %v111_v13  ;;  %v286_v20 = vmul.f32 -1.442695, %v227_v14 }
  0xdb   :  { %v277_v22 = vmul.f32 -1.442695, %v113_v17  ;;  %v287_v23 = vmul.f32 -1.442695, %v229_v18  ;;  %v116_v24 = vpop.f32.mrb[2].mxu0  ;;  %v232_v25 = vpop.f32.mrb[2].mxu1 }
  0xdc   :  { %295 = vpow2.f32 %v276_v19  ;;  %v117_v26 = vadd.f32 %v116_v24, %v28_v21  ;;  %v233_v27 = vadd.f32 %v232_v25, %v28_v21  ;;  %v118_v28 = vpop.f32.mrb[3].mxu0  ;;  %v234_v29 = vpop.f32.mrb[3].mxu1 }
  0xdd   :  { %297 = vpow2.f32 %v286_v20  ;;  %v119_v30 = vadd.f32 %v118_v28, %v28_v21  ;;  %v235_v31 = vadd.f32 %v234_v29, %v28_v21 }
  0xde   :  { %299 = vpow2.f32 %v277_v22  ;;  %v278_v32 = vmul.f32 -1.442695, %v117_v26  ;;  %v288_v33 = vmul.f32 -1.442695, %v233_v27 }
  0xdf   :  { %301 = vpow2.f32 %v287_v23  ;;  %v279_v34 = vmul.f32 -1.442695, %v119_v30  ;;  %v289_v35 = vmul.f32 -1.442695, %v235_v31 }
  0xe0   :  { %303 = vpow2.f32 %v278_v32 }
  0xe1   :  { %305 = vpow2.f32 %v288_v33 }
  0xe2   :  { %307 = vpow2.f32 %v279_v34 }
  0xe3   :  { %309 = vpow2.f32 %v289_v35 }
  0xe6   :  { %v296_v36 = vpop.eup %295 }
  0xe7   :  { %v298_v37 = vpop.eup %297  ;;  %v127_v38 = vadd.f32 1.0, %v296_v36 }
  0xe8   :  { %v300_v39 = vpop.eup %299  ;;  %v243_v40 = vadd.f32 1.0, %v298_v37 }
  0xe9   :  { %v302_v41 = vpop.eup %301  ;;  %311 = vrcp.f32 %v127_v38  ;;  %v128_v42 = vadd.f32 1.0, %v300_v39 }
  0xea   :  { %v304_v43 = vpop.eup %303  ;;  %313 = vrcp.f32 %v243_v40  ;;  %v244_v44 = vadd.f32 1.0, %v302_v41 }
  0xeb   :  { %v306_v45 = vpop.eup %305  ;;  %315 = vrcp.f32 %v128_v42  ;;  %v141_v46 = vadd.f32 1.0, %v304_v43 }
  0xec   :  { %v308_v47 = vpop.eup %307  ;;  %317 = vrcp.f32 %v244_v44  ;;  %v257_v48 = vadd.f32 1.0, %v306_v45 }
  0xed   :  { %v310_v49 = vpop.eup %309  ;;  %319 = vrcp.f32 %v141_v46  ;;  %v142_v50 = vadd.f32 1.0, %v308_v47 }
  0xee   :  { %321 = vrcp.f32 %v257_v48  ;;  %v258_v51 = vadd.f32 1.0, %v310_v49 }
  0xef   :  { %323 = vrcp.f32 %v142_v50 }
  0xf0   :  { %325 = vrcp.f32 %v258_v51 }
  0xf3   :  { %v312_v52 = vpop.eup %311 }
  0xf4   :  { %v314_v53 = vpop.eup %313  ;;  %v133_v56 = vmul.f32 %v312_v52, %v111_v13 }
  0xf5   :  { %v316_v54 = vpop.eup %315  ;;  %v249_v58 = vmul.f32 %v314_v53, %v227_v14 }
  0xf6   :  { %v318_v55 = vpop.eup %317  ;;  %v134_v60 = vmul.f32 %v316_v54, %v113_v17 }
  0xf7   :  { %v320_v57 = vpop.eup %319  ;;  %v250_v63 = vmul.f32 %v318_v55, %v229_v18 }
  0xf8   :  { %v322_v59 = vpop.eup %321  ;;  %v147_v61 = vadd.f32 %v320_v57, %v133_v56 }
  0xf9   :  { %v324_v62 = vpop.eup %323  ;;  %v263_v0 = vadd.f32 %v322_v59, %v249_v58 }
  0xfa   :  { %v326_v1 = vpop.eup %325  ;;  %149 = vst [vmem:[%s392_s3] sm:$0x7f] %v147_v61  ;;  %v148_v2 = vadd.f32 %v324_v62, %v134_v60 }
  0xfb   :  { %290 = vst [vmem:[%s392_s3 + $0x10] sm:$0x7f] %v263_v0  ;;  %v264_v3 = vadd.f32 %v326_v1, %v250_v63 }
  0xfc   :  { %150 = vst [vmem:[%s392_s3 + $0x8] sm:$0x7f] %v148_v2 }
  0xfd   :  { %291 = vst [vmem:[%s392_s3 + $0x18] sm:$0x7f] %v264_v3 }

</bundles_post_ra>
